<compile_context>
chip_gen: v7x
topology: tpu7x:2x2x1
jax: 0.10.0
libtpu: 0.0.40
codegen_flags: <defaults>
</compile_context>

<pallas_src>
import functools
import math

import jax
import jax.numpy as jnp
from jax.experimental import pallas as pl
from jax.experimental.pallas import tpu as pltpu


NUM_CLASSES = 10
LANE = 128


# ---------------------------------------------------------------------------
# Fused kernel: attention (+residual) -> max-pool(L) -> FC+BN+SELU -> FC
# Each grid step processes a (Bt, L, C) slab of the batch.
# ---------------------------------------------------------------------------
def fused_classifier_kernel(x_ref, w1_ref, b1_ref, w2_ref, b2_ref,
                            attn_ref, logits_ref, *, mm_dtype):
    x = x_ref[...]                                        # (Bt, L, C) f32
    c = x.shape[-1]
    inv_sqrt_c = 1.0 / math.sqrt(float(c))

    # Scaled dot-product scores: contract channel axis of both operands
    # (no explicit transpose / XLU pass before the MXU).
    xm = x.astype(mm_dtype)
    scores = jnp.einsum("blc,bkc->blk", xm, xm,
                        preferred_element_type=jnp.float32) * inv_sqrt_c

    # Softmax over keys (f32 math; reciprocal on the EUP slot).
    m = jnp.max(scores, axis=-1, keepdims=True)
    p = jnp.exp(scores - m)
    denom = jnp.sum(p, axis=-1, keepdims=True)
    attn = p * pl.reciprocal(denom, approx=True)          # (Bt, L, L)
    attn_ref[...] = attn.astype(attn_ref.dtype)

    # Residual attention output, then AdaptiveMaxPool1d(1) == max over length.
    out = x + jnp.einsum("blk,bkc->blc", attn.astype(mm_dtype), xm,
                         preferred_element_type=jnp.float32)
    pooled = jnp.max(out, axis=1)                         # (Bt, C)

    # Linear(128,128) with BatchNorm1d folded in (inference), Dropout=identity.
    h = jnp.dot(pooled, w1_ref[...],
                preferred_element_type=jnp.float32) + b1_ref[...]

    # SELU
    alpha = 1.6732632423543772
    scale = 1.0507009873554805
    h = scale * jnp.where(h > 0.0, h, alpha * (jnp.exp(h) - 1.0))

    # Linear(128,10), padded to 128 output lanes (zeros beyond class 10).
    logits = jnp.dot(h, w2_ref[...],
                     preferred_element_type=jnp.float32) + b2_ref[...]
    logits_ref[...] = logits.astype(logits_ref.dtype)     # (Bt, 128)


# ---------------------------------------------------------------------------
# Wrapper
# ---------------------------------------------------------------------------
def classifier_forward(x, params, *, mm_dtype=jnp.float32):
    """x: (B, C=128, L) float32 (PyTorch NCL layout). Returns (logits, attn)."""
    B, C, L = x.shape
    x_t = jnp.transpose(x, (0, 2, 1))  # (B, L, C): 128-channel axis lane-dense

    # --- choose batch tile Bt from a conservative per-step VMEM budget ------
    # per-batch working set: x tile, attn tile, scores/p, residual out,
    # pooled/h/logits, times ~double-buffering on the I/O tiles.
    per_batch_bytes = 4 * (3 * L * C + 3 * L * L + 2 * C + 2 * LANE)
    budget_bytes = 8 * 1024 * 1024        # fits scoped VMEM on v5e/v6e/v7x
    bt = max(1, min(B, budget_bytes // per_batch_bytes, 512))
    if bt < B:
        bt = max(8, (bt // 8) * 8)        # keep logits block sublane-aligned
    n_blocks = pl.cdiv(B, bt)
    b_pad = n_blocks * bt
    if b_pad != B:
        x_t = jnp.pad(x_t, ((0, b_pad - B), (0, 0), (0, 0)))

    # --- fold BatchNorm1d (eval) into the first Linear ----------------------
    eps = 1e-5
    bn_scale = params["bn_gamma"] / jnp.sqrt(params["bn_var"] + eps)   # (C,)
    bn_shift = params["bn_beta"] - params["bn_mean"] * bn_scale        # (C,)
    w1f = params["w1"].T * bn_scale[None, :]                           # (C, C)
    b1f = (params["b1"] * bn_scale + bn_shift).reshape(1, C)           # (1, C)

    # --- pad the 10-class head to 128 lanes ---------------------------------
    w2t = params["w2"].T                                               # (C, 10)
    n_out = w2t.shape[1]
    w2p = jnp.zeros((C, LANE), jnp.float32).at[:, :n_out].set(w2t)
    b2p = jnp.zeros((1, LANE), jnp.float32).at[:, :n_out].set(params["b2"])

    kernel = functools.partial(fused_classifier_kernel, mm_dtype=mm_dtype)

    attn, logits_pad = pl.pallas_call(
        kernel,
        out_shape=(
            jax.ShapeDtypeStruct((b_pad, L, L), jnp.float32),
            jax.ShapeDtypeStruct((b_pad, LANE), jnp.float32),
        ),
        grid=(n_blocks,),
        in_specs=[
            pl.BlockSpec((bt, L, C), lambda b: (b, 0, 0)),     # x tile
            pl.BlockSpec((C, C), lambda b: (0, 0)),            # w1 (folded BN)
            pl.BlockSpec((1, C), lambda b: (0, 0)),            # b1 (folded BN)
            pl.BlockSpec((C, LANE), lambda b: (0, 0)),         # w2 (padded)
            pl.BlockSpec((1, LANE), lambda b: (0, 0)),         # b2 (padded)
        ],
        out_specs=(
            pl.BlockSpec((bt, L, L), lambda b: (b, 0, 0)),     # attention weights
            pl.BlockSpec((bt, LANE), lambda b: (b, 0)),        # padded logits
        ),
        compiler_params=pltpu.CompilerParams(
            dimension_semantics=("parallel",),
            vmem_limit_bytes=32 * 1024 * 1024,
        ),
    )(x_t, w1f, b1f, w2p, b2p)

    return logits_pad[:B, :n_out], attn[:B]


def init_params(key, C=128, num_classes=NUM_CLASSES):
    """Deterministic init mirroring Classifier.init_weights()."""
    k1, k2 = jax.random.split(key, 2)
    return {
        # nn.Linear: weight ~ N(0, 0.001^2), bias = 0
        "w1": 0.001 * jax.random.normal(k1, (C, C), jnp.float32),
        "b1": jnp.zeros((C,), jnp.float32),
        "w2": 0.001 * jax.random.normal(k2, (num_classes, C), jnp.float32),
        "b2": jnp.zeros((num_classes,), jnp.float32),
        # nn.BatchNorm1d: gamma = 1, beta = 0, running stats at init
        "bn_gamma": jnp.ones((C,), jnp.float32),
        "bn_beta": jnp.zeros((C,), jnp.float32),
        "bn_mean": jnp.zeros((C,), jnp.float32),
        "bn_var": jnp.ones((C,), jnp.float32),
    }


if __name__ == "__main__":
    B, C, L = 2, 128, 16          # C=128 fixed by the module's Linear layers
    key = jax.random.PRNGKey(0)
    k_x, k_p = jax.random.split(key)

    x = jax.random.normal(k_x, (B, C, L), jnp.float32)   # NCL layout, as PyTorch
    params = init_params(k_p, C=C, num_classes=NUM_CLASSES)

    logits, attn = jax.jit(classifier_forward)(x, params)
    jax.block_until_ready((logits, attn))

    assert logits.shape == (B, NUM_CLASSES)
    assert attn.shape == (B, L, L)
    print("KERNEL_OK")
</pallas_src>

<mosaic_0001>
module attributes {stable_mosaic.version = 11 : i64} {
  func.func @fused_classifier_kernel(%arg0: i32, %arg1: memref<2x16x128xf32, #tpu.memory_space<vmem>>, %arg2: memref<128x128xf32, #tpu.memory_space<vmem>>, %arg3: memref<1x128xf32, #tpu.memory_space<vmem>>, %arg4: memref<128x128xf32, #tpu.memory_space<vmem>>, %arg5: memref<1x128xf32, #tpu.memory_space<vmem>>, %arg6: memref<2x16x16xf32, #tpu.memory_space<vmem>>, %arg7: memref<2x128xf32, #tpu.memory_space<vmem>>) attributes {dimension_semantics = [#tpu.dimension_semantics<parallel>], iteration_bounds = array<i64: 1>, scalar_prefetch = 0 : i64, scratch_operands = 0 : i64, tpu.core_type = #tpu.core_type<tc>, window_params = [{transform_indices = @transform_0, window_bounds = array<i64: 2, 16, 128>}, {pipeline_mode = #tpu.pipeline_mode<synchronous>, transform_indices = @transform_1, window_bounds = array<i64: 128, 128>}, {pipeline_mode = #tpu.pipeline_mode<synchronous>, transform_indices = @transform_2, window_bounds = array<i64: 1, 128>}, {pipeline_mode = #tpu.pipeline_mode<synchronous>, transform_indices = @transform_3, window_bounds = array<i64: 128, 128>}, {pipeline_mode = #tpu.pipeline_mode<synchronous>, transform_indices = @transform_4, window_bounds = array<i64: 1, 128>}, {transform_indices = @transform_5, window_bounds = array<i64: 2, 16, 16>}, {transform_indices = @transform_6, window_bounds = array<i64: 2, 128>}]} {
    %c0 = arith.constant 0 : index
    %c0_0 = arith.constant 0 : index
    %c0_1 = arith.constant 0 : index
    %0 = vector.load %arg1[%c0, %c0_0, %c0_1] : memref<2x16x128xf32, #tpu.memory_space<vmem>>, vector<2x16x128xf32>
    "tpu.trace_start"() <{level = 10 : i32, message = "blc,bkc->blk"}> : () -> ()
    %cst = arith.constant dense<0.000000e+00> : vector<2x16x16xf32>
    %1 = tpu.matmul %0, %0, %cst {dimension_numbers = #tpu.dot_dimension_numbers<[2], [2], [1], [1], [0, 0, 0, 1, 1, 1], [0], [0]>} : vector<2x16x128xf32>, vector<2x16x128xf32>, vector<2x16x16xf32> -> vector<2x16x16xf32>
    "tpu.trace_stop"() : () -> ()
    %cst_2 = arith.constant 0.0883883461 : f32
    %2 = vector.broadcast %cst_2 : f32 to vector<2x16x16xf32>
    %3 = arith.mulf %1, %2 : vector<2x16x16xf32>
    %cst_3 = arith.constant dense<0xFF800000> : vector<2x16xf32>
    %4 = vector.multi_reduction <maximumf>, %3, %cst_3 [2] : vector<2x16x16xf32> to vector<2x16xf32>
    %5 = vector.shape_cast %4 : vector<2x16xf32> to vector<2x16x1xf32>
    %6 = vector.broadcast %5 : vector<2x16x1xf32> to vector<2x16x16xf32>
    %7 = arith.subf %3, %6 : vector<2x16x16xf32>
    %8 = math.exp %7 : vector<2x16x16xf32>
    %cst_4 = arith.constant dense<0.000000e+00> : vector<2x16xf32>
    %9 = vector.multi_reduction <add>, %8, %cst_4 [2] : vector<2x16x16xf32> to vector<2x16xf32>
    %10 = vector.shape_cast %9 : vector<2x16xf32> to vector<2x16x1xf32>
    %11 = tpu.reciprocal %10 {approx = true} : vector<2x16x1xf32> -> vector<2x16x1xf32>
    %12 = vector.broadcast %11 : vector<2x16x1xf32> to vector<2x16x16xf32>
    %13 = arith.mulf %8, %12 : vector<2x16x16xf32>
    %c0_5 = arith.constant 0 : index
    %c0_6 = arith.constant 0 : index
    %c0_7 = arith.constant 0 : index
    %14 = vector.load %arg6[%c0_5, %c0_6, %c0_7] : memref<2x16x16xf32, #tpu.memory_space<vmem>>, vector<2x16x16xf32>
    tpu.vector_store %arg6[%c0_5, %c0_6, %c0_7], %13 {strides = array<i32>} : memref<2x16x16xf32, #tpu.memory_space<vmem>>, vector<2x16x16xf32>,
    "tpu.trace_start"() <{level = 10 : i32, message = "blk,bkc->blc"}> : () -> ()
    %cst_8 = arith.constant dense<0.000000e+00> : vector<2x16x128xf32>
    %15 = tpu.matmul %13, %0, %cst_8 {dimension_numbers = #tpu.dot_dimension_numbers<[2], [1], [1], [2], [0, 0, 0, 1, 1, 2], [0], [0]>} : vector<2x16x16xf32>, vector<2x16x128xf32>, vector<2x16x128xf32> -> vector<2x16x128xf32>
    "tpu.trace_stop"() : () -> ()
    %16 = arith.addf %0, %15 : vector<2x16x128xf32>
    %cst_9 = arith.constant dense<0xFF800000> : vector<2x128xf32>
    %17 = vector.multi_reduction <maximumf>, %16, %cst_9 [1] : vector<2x16x128xf32> to vector<2x128xf32>
    %c0_10 = arith.constant 0 : index
    %c0_11 = arith.constant 0 : index
    %18 = vector.load %arg2[%c0_10, %c0_11] : memref<128x128xf32, #tpu.memory_space<vmem>>, vector<128x128xf32>
    %cst_12 = arith.constant dense<0.000000e+00> : vector<2x128xf32>
    %19 = tpu.matmul %17, %18, %cst_12 {dimension_numbers = #tpu.dot_dimension_numbers<[1], [0], [0], [1], [0, 0, 1, 1], [], []>} : vector<2x128xf32>, vector<128x128xf32>, vector<2x128xf32> -> vector<2x128xf32>
    %c0_13 = arith.constant 0 : index
    %c0_14 = arith.constant 0 : index
    %20 = vector.load %arg3[%c0_13, %c0_14] : memref<1x128xf32, #tpu.memory_space<vmem>>, vector<1x128xf32>
    %21 = vector.broadcast %20 : vector<1x128xf32> to vector<2x128xf32>
    %22 = arith.addf %19, %21 : vector<2x128xf32>
    %cst_15 = arith.constant 0.000000e+00 : f32
    %23 = vector.broadcast %cst_15 : f32 to vector<2x128xf32>
    %24 = arith.cmpf ogt, %22, %23 : vector<2x128xf32>
    %25 = math.exp %22 : vector<2x128xf32>
    %cst_16 = arith.constant 1.000000e+00 : f32
    %26 = vector.broadcast %cst_16 : f32 to vector<2x128xf32>
    %27 = arith.subf %25, %26 : vector<2x128xf32>
    %cst_17 = arith.constant 1.67326319 : f32
    %28 = vector.broadcast %cst_17 : f32 to vector<2x128xf32>
    %29 = arith.mulf %28, %27 : vector<2x128xf32>
    %30 = arith.select %24, %22, %29 : vector<2x128xi1>, vector<2x128xf32>
    %cst_18 = arith.constant 1.05070102 : f32
    %31 = vector.broadcast %cst_18 : f32 to vector<2x128xf32>
    %32 = arith.mulf %31, %30 : vector<2x128xf32>
    %c0_19 = arith.constant 0 : index
    %c0_20 = arith.constant 0 : index
    %33 = vector.load %arg4[%c0_19, %c0_20] : memref<128x128xf32, #tpu.memory_space<vmem>>, vector<128x128xf32>
    %cst_21 = arith.constant dense<0.000000e+00> : vector<2x128xf32>
    %34 = tpu.matmul %32, %33, %cst_21 {dimension_numbers = #tpu.dot_dimension_numbers<[1], [0], [0], [1], [0, 0, 1, 1], [], []>} : vector<2x128xf32>, vector<128x128xf32>, vector<2x128xf32> -> vector<2x128xf32>
    %c0_22 = arith.constant 0 : index
    %c0_23 = arith.constant 0 : index
    %35 = vector.load %arg5[%c0_22, %c0_23] : memref<1x128xf32, #tpu.memory_space<vmem>>, vector<1x128xf32>
    %36 = vector.broadcast %35 : vector<1x128xf32> to vector<2x128xf32>
    %37 = arith.addf %34, %36 : vector<2x128xf32>
    %c0_24 = arith.constant 0 : index
    %c0_25 = arith.constant 0 : index
    %38 = vector.load %arg7[%c0_24, %c0_25] : memref<2x128xf32, #tpu.memory_space<vmem>>, vector<2x128xf32>
    tpu.vector_store %arg7[%c0_24, %c0_25], %37 {strides = array<i32>} : memref<2x128xf32, #tpu.memory_space<vmem>>, vector<2x128xf32>,
    return
  }
  func.func @transform_0(%arg0: i32) -> (i32, i32, i32) {
    %c0_i32 = arith.constant 0 : i32
    %c0_i32_0 = arith.constant 0 : i32
    %c0_i32_1 = arith.constant 0 : i32
    return %arg0, %c0_i32, %c0_i32_0 : i32, i32, i32
  }
  func.func @transform_1(%arg0: i32) -> (i32, i32) {
    %c0_i32 = arith.constant 0 : i32
    %c0_i32_0 = arith.constant 0 : i32
    %c0_i32_1 = arith.constant 0 : i32
    return %c0_i32, %c0_i32_0 : i32, i32
  }
  func.func @transform_2(%arg0: i32) -> (i32, i32) {
    %c0_i32 = arith.constant 0 : i32
    %c0_i32_0 = arith.constant 0 : i32
    %c0_i32_1 = arith.constant 0 : i32
    return %c0_i32, %c0_i32_0 : i32, i32
  }
  func.func @transform_3(%arg0: i32) -> (i32, i32) {
    %c0_i32 = arith.constant 0 : i32
    %c0_i32_0 = arith.constant 0 : i32
    %c0_i32_1 = arith.constant 0 : i32
    return %c0_i32, %c0_i32_0 : i32, i32
  }
  func.func @transform_4(%arg0: i32) -> (i32, i32) {
    %c0_i32 = arith.constant 0 : i32
    %c0_i32_0 = arith.constant 0 : i32
    %c0_i32_1 = arith.constant 0 : i32
    return %c0_i32, %c0_i32_0 : i32, i32
  }
  func.func @transform_5(%arg0: i32) -> (i32, i32, i32) {
    %c0_i32 = arith.constant 0 : i32
    %c0_i32_0 = arith.constant 0 : i32
    %c0_i32_1 = arith.constant 0 : i32
    return %arg0, %c0_i32, %c0_i32_0 : i32, i32, i32
  }
  func.func @transform_6(%arg0: i32) -> (i32, i32) {
    %c0_i32 = arith.constant 0 : i32
    %c0_i32_0 = arith.constant 0 : i32
    return %arg0, %c0_i32 : i32, i32
  }
}

</mosaic_0001>

<bundles_post_ra>
// kernel: classifier_forward.1
= control target key start
LH: loop header
LB: loop body
LE: loop exit
PB: predicated region body
PF: predicated region fallthrough
CT: control target
= control target key end

     0   :  { %12 = vsyncpa [#allocation3], 0  ;;  %s1164_s0 = inlined_call_operand.vmem [shape: f32[2,16,128], index: 0, kind: input, shape index: {}]   ;;  %s1165_s1 = inlined_call_operand.vmem [shape: f32[128,128], index: 1, kind: input, shape index: {}]   ;;  %s1166_s2 = inlined_call_operand.vmem [shape: f32[1,128], index: 2, kind: input, shape index: {}]   ;;  %s1167_s3 = inlined_call_operand.vmem [shape: f32[128,128], index: 3, kind: input, shape index: {}]   ;;  %s1168_s4 = inlined_call_operand.vmem [shape: f32[1,128], index: 4, kind: input, shape index: {}]   ;;  %s1169_s5 = inlined_call_operand.hbm [shape: f32[2,16,16], index: 5, kind: output, shape index: {0}]   ;;  %s1170_s6 = inlined_call_operand.hbm [shape: f32[2,128], index: 6, kind: output, shape index: {1}]  }
   0x1   :  { %v977_v0 = vld [vmem:[%s1164_s0] sm:$0xff]  ;;  %v982_v1 = vld [vmem:[%s1164_s0 + $0x8] sm:$0xff]  ;;  %v987_v2 = vld [vmem:[%s1164_s0 + $0x10] sm:$0xff] }
   0x2   :  { %v795_v3 = vpack.c.bf16 %v982_v1, %v977_v0  ;;  %v994_v4 = vld [vmem:[%s1164_s0 + $0x18] sm:$0xff]  ;;  %701 = vmatprep.mubr.f32.mxu0 %v977_v0  ;;  %708 = vmatprep.mubr.f32.mxu1 %v987_v2 }
   0x3   :  { %13 = vsyncpa [#allocation5], 0  ;;  %v799_v5 = vpack.c.bf16 %v994_v4, %v987_v2  ;;  %vm182_vm0 = vcmask 130048   ;;  %v932_v38 = vmov 0.0|0.0   ;;  %v411_v45 = vld [vmem:[%s1165_s1] sm:$0xff]  ;;  %v412_v46 = vld [vmem:[%s1165_s1 + $0x8] sm:$0xff] }
   0x4   :  { %796 = vmatprep.subr.bf16.mxu0 %v795_v3  ;;  %v812_v50 = vpack.c.bf16 %v412_v46, %v411_v45  ;;  %v413_v52 = vld [vmem:[%s1165_s1 + $0x10] sm:$0xff]  ;;  %v414_v53 = vld [vmem:[%s1165_s1 + $0x18] sm:$0xff]  ;;  %v415_v57 = vld [vmem:[%s1165_s1 + $0x20] sm:$0xff]  ;;  %vm933_vm1 = vmmov 0   ;;  %vm436_vm2 = vcmask 1041409   ;;  %s935_s18 = smov [#allocation2]  }
   0x5   :  { %798 = vmatpush3.bf16.xpose.msra.mxu0 %v795_v3  ;;  %800 = vmatprep.subr.bf16.mxu1 %v799_v5  ;;  %v815_v56 = vpack.c.bf16 %v414_v53, %v413_v52  ;;  %v416_v58 = vld [vmem:[%s1165_s1 + $0x28] sm:$0xff]  ;;  %v417_v60 = vld [vmem:[%s1165_s1 + $0x30] sm:$0xff]  ;;  %v418_v61 = vld [vmem:[%s1165_s1 + $0x38] sm:$0xff] }
   0x6   :  { %802 = vmatpush3.bf16.xpose.msra.mxu1 %v799_v5  ;;  %804 = vmatprep.subr.bf16.mxu0 %v795_v3  ;;  %v818_v59 = vpack.c.bf16 %v416_v58, %v415_v57  ;;  %v821_v62 = vpack.c.bf16 %v418_v61, %v417_v60  ;;  %v419_v63 = vld [vmem:[%s1165_s1 + $0x40] sm:$0xff]  ;;  %v522_v45 = vld [vmem:[%s1167_s3 + $0x30] sm:$0xff]  ;;  %v523_v46 = vld [vmem:[%s1167_s3 + $0x38] sm:$0xff] }
   0x7   :  { %808 = vmatprep.subr.bf16.mxu1 %v799_v5  ;;  %v527_v52 = vld [vmem:[%s1167_s3 + $0x58] sm:$0xff]  ;;  %v530_v57 = vld [vmem:[%s1167_s3 + $0x70] sm:$0xff]  ;;  %v644_v60 = vld [vmem:[%s1166_s2] ss:$0 sm:$0xff] }
   0x8   :  { %v531_v58 = vld [vmem:[%s1167_s3 + $0x78] sm:$0xff] }
   0xc   :  { %702 = vmatmul.mubr.f32.vlgmr.msra.gmra.mrb[0].mxu0 %v982_v1 }
   0xd   :  { %709 = vmatmul.mubr.f32.vlgmr.msra.gmra.mrb[0].mxu1 %v994_v4  ;;  %806 = vmatpush3.bf16.msra.mxu0 %v795_v3  ;;  %v420_v3 = vld [vmem:[%s1165_s1 + $0x48] sm:$0xff] }
   0xe   :  { %810 = vmatpush3.bf16.msra.mxu1 %v799_v5  ;;  %811 = vmatprep.subr.bf16.mxu0 %v932_v38  ;;  %v824_v5 = vpack.c.bf16 %v420_v3, %v419_v63 }
   0xf   :  { %835 = vmatprep.subr.bf16.mxu1 %v932_v38 }
  0xdf   :  { %v703_v6 = vpop.f32.mrb[0].mxu0 }
  0xe0   :  { %v179_v7 = vmul.f32 0.088388346, %v703_v6  ;;  %v94_v8 = vpop.f32.mrb[1].mxu0  ;;  %v710_v9 = vpop.f32.mrb[0].mxu1  ;;  %v421_v6 = vld [vmem:[%s1165_s1 + $0x50] sm:$0xff] }
  0xe1   :  { %v178_v10 = vmul.f32 0.088388346, %v94_v8  ;;  %v181_v11 = vmul.f32 0.088388346, %v710_v9  ;;  %v169_v12 = vpop.f32.mrb[1].mxu1  ;;  %v423_v9 = vld [vmem:[%s1165_s1 + $0x60] sm:$0xff] }
  0xe2   :  { %v180_v13 = vmul.f32 0.088388346, %v169_v12  ;;  %v186_v14 = vsel %vm182_vm0, %v179_v7, -inf  ;;  %v425_v12 = vld [vmem:[%s1165_s1 + $0x70] sm:$0xff] }
  0xe3   :  { %187 = vmax.xlane.f32.xlu1 %v186_v14  ;;  %v183_v15 = vsel %vm182_vm0, %v178_v10, -inf  ;;  %v192_v16 = vsel %vm182_vm0, %v181_v11, -inf }
  0xe4   :  { %184 = vmax.xlane.f32.xlu0 %v183_v15  ;;  %v189_v17 = vsel %vm182_vm0, %v180_v13, -inf  ;;  %v934_v15 = vmov 0.0  }
  0xe7   :  { %193 = vmax.xlane.f32.xlu1 %v192_v16  ;;  %v516_v16 = vld [vmem:[%s1167_s3] sm:$0xff] }
  0xe8   :  { %190 = vmax.xlane.f32.xlu0 %v189_v17  ;;  %v517_v17 = vld [vmem:[%s1167_s3 + $0x8] sm:$0xff] }
 0x170   :  { %v188_v18 = vpop.xlane.xlu1 %187 }
 0x171   :  { %v196_v19 = vsub.f32 %v179_v7, %v188_v18  ;;  %v185_v20 = vpop.xlane.xlu0 %184  ;;  %v422_v7 = vld [vmem:[%s1165_s1 + $0x58] sm:$0xff]  ;;  %v518_v18 = vld [vmem:[%s1167_s3 + $0x10] sm:$0xff] }
 0x172   :  { %v195_v21 = vsub.f32 %v178_v10, %v185_v20  ;;  %v827_v8 = vpack.c.bf16 %v422_v7, %v421_v6  ;;  %v424_v10 = vld [vmem:[%s1165_s1 + $0x68] sm:$0xff]  ;;  %v519_v20 = vld [vmem:[%s1167_s3 + $0x18] sm:$0xff] }
 0x173   :  { %v201_v22 = vmul.f32 1.442695, %v196_v19  ;;  %v836_v19 = vpack.c.bf16 %v517_v17, %v516_v16 }
 0x174   :  { %v199_v23 = vmul.f32 1.442695, %v195_v21  ;;  %v194_v24 = vpop.xlane.xlu1 %193  ;;  %v839_v21 = vpack.c.bf16 %v519_v20, %v518_v18 }
 0x175   :  { %v198_v25 = vsub.f32 %v181_v11, %v194_v24  ;;  %v191_v26 = vpop.xlane.xlu0 %190  ;;  %v830_v11 = vpack.c.bf16 %v424_v10, %v423_v9 }
 0x176   :  { %866 = vpow2.f32 %v199_v23  ;;  %v197_v27 = vsub.f32 %v180_v13, %v191_v26  ;;  %v426_v13 = vld [vmem:[%s1165_s1 + $0x78] sm:$0xff] }
 0x177   :  { %868 = vpow2.f32 %v201_v22  ;;  %v205_v28 = vmul.f32 1.442695, %v198_v25  ;;  %v833_v14 = vpack.c.bf16 %v426_v13, %v425_v12 }
 0x178   :  { %v203_v29 = vmul.f32 1.442695, %v197_v27 }
 0x17a   :  { %870 = vpow2.f32 %v203_v29 }
 0x17b   :  { %872 = vpow2.f32 %v205_v28 }
 0x180   :  { %v867_v30 = vpop.eup %866 }
 0x181   :  { %v207_v31 = vsel %vm182_vm0, %v867_v30, 0.0  ;;  %v869_v32 = vpop.eup %868 }
 0x182   :  { %208 = vadd.xlane.f32.xlu0 %v207_v31  ;;  %v210_v34 = vsel %vm182_vm0, %v869_v32, 0.0 }
 0x184   :  { %v871_v33 = vpop.eup %870 }
 0x185   :  { %v213_v35 = vsel %vm182_vm0, %v871_v33, 0.0  ;;  %v873_v36 = vpop.eup %872 }
 0x186   :  { %211 = vadd.xlane.f32.xlu0 %v210_v34  ;;  %214 = vadd.xlane.f32.xlu1 %v213_v35  ;;  %v216_v37 = vsel %vm182_vm0, %v873_v36, 0.0 }
 0x18a   :  { %217 = vadd.xlane.f32.xlu1 %v216_v37 }
 0x20f   :  { %v209_v39 = vpop.xlane.xlu0 %208 }
 0x210   :  { %874 = vrcp.f32 %v209_v39 }
 0x213   :  { %v215_v40 = vpop.xlane.xlu1 %214  ;;  %v212_v41 = vpop.xlane.xlu0 %211 }
 0x214   :  { %876 = vrcp.f32 %v215_v40 }
 0x215   :  { %878 = vrcp.f32 %v212_v41 }
 0x217   :  { %v218_v42 = vpop.xlane.xlu1 %217 }
 0x218   :  { %880 = vrcp.f32 %v218_v42 }
 0x21a   :  { %v875_v43 = vpop.eup %874 }
 0x21b   :  { %v223_v44 = vmul.f32 %v875_v43, %v867_v30 }
 0x21d   :  { %227 = vst.msk [vmem:[#allocation2] sm:$0xff] %vm182_vm0, %v223_v44  ;;  %715 = vmatprep.mubr.msk.f32.mxu0 %vm182_vm0, %v223_v44 }
 0x21e   :  { %v877_v47 = vpop.eup %876 }
 0x21f   :  { %v879_v48 = vpop.eup %878  ;;  %v225_v49 = vmul.f32 %v877_v47, %v871_v33  ;;  %v845_v47 = vpack.c.bf16 %v523_v46, %v522_v45 }
 0x220   :  { %v224_v51 = vmul.f32 %v879_v48, %v869_v32  ;;  %v524_v48 = vld [vmem:[%s1167_s3 + $0x40] sm:$0xff] }
 0x221   :  { %229 = vst.msk [vmem:[#allocation2 + $0x10] sm:$0xff] %vm182_vm0, %v225_v49  ;;  %722 = vmatprep.mubr.msk.f32.mxu1 %vm182_vm0, %v225_v49  ;;  %v525_v49 = vld [vmem:[%s1167_s3 + $0x48] sm:$0xff] }
 0x222   :  { %v881_v54 = vpop.eup %880  ;;  %228 = vst.msk [vmem:[#allocation2 + $0x8] sm:$0xff] %vm182_vm0, %v224_v51  ;;  %716 = vmatmul.mubr.msk.f32.vlgmr.msra.gmra.mrb[2].mxu0 %vm182_vm0, %v224_v51  ;;  %v526_v51 = vld [vmem:[%s1167_s3 + $0x50] sm:$0xff] }
 0x223   :  { %v226_v55 = vmul.f32 %v881_v54, %v873_v36  ;;  %813 = vmatpush3.bf16.msra.mxu0 %v812_v50  ;;  %757 = vmatprep.mubr.msk.f32.mxu0 %vm933_vm1, %v934_v15  ;;  %v848_v50 = vpack.c.bf16 %v525_v49, %v524_v48  ;;  %v851_v53 = vpack.c.bf16 %v527_v52, %v526_v51  ;;  %v528_v54 = vld [vmem:[%s1167_s3 + $0x60] sm:$0xff] }
 0x224   :  { %814 = vmatprep.subr.bf16.mxu0 %v932_v38 }
 0x225   :  { %230 = vst.msk [vmem:[#allocation2 + $0x18] sm:$0xff] %vm182_vm0, %v226_v55  ;;  %723 = vmatmul.mubr.msk.f32.vlgmr.msra.gmra.mrb[2].mxu1 %vm182_vm0, %v226_v55  ;;  %v529_v55 = vld [vmem:[%s1167_s3 + $0x68] sm:$0xff] }
 0x226   :  { %792 = vmatprep.mubr.msk.f32.mxu1 %vm933_vm1, %v934_v15  ;;  %837 = vmatpush3.bf16.msra.mxu1 %v836_v19 }
 0x227   :  { %816 = vmatpush3.bf16.msra.mxu0 %v815_v56  ;;  %838 = vmatprep.subr.bf16.mxu1 %v932_v38  ;;  %v854_v56 = vpack.c.bf16 %v529_v55, %v528_v54 }
 0x228   :  { %817 = vmatprep.subr.bf16.mxu0 %v932_v38 }
 0x22a   :  { %840 = vmatpush3.bf16.msra.mxu1 %v839_v21 }
 0x22b   :  { %819 = vmatpush3.bf16.msra.mxu0 %v818_v59  ;;  %841 = vmatprep.subr.bf16.mxu1 %v932_v38  ;;  %v857_v59 = vpack.c.bf16 %v531_v58, %v530_v57 }
 0x22c   :  { %820 = vmatprep.subr.bf16.mxu0 %v932_v38 }
 0x22f   :  { %822 = vmatpush3.bf16.msra.mxu0 %v821_v62 }
 0x230   :  { %823 = vmatprep.subr.bf16.mxu0 %v932_v38 }
 0x233   :  { %825 = vmatpush3.bf16.msra.mxu0 %v824_v5 }
 0x234   :  { %826 = vmatprep.subr.bf16.mxu0 %v932_v38 }
 0x237   :  { %828 = vmatpush3.bf16.msra.mxu0 %v827_v8 }
 0x238   :  { %829 = vmatprep.subr.bf16.mxu0 %v932_v38 }
 0x23b   :  { %831 = vmatpush3.bf16.msra.mxu0 %v830_v11 }
 0x23c   :  { %832 = vmatprep.subr.bf16.mxu0 %v932_v38 }
 0x23f   :  { %834 = vmatpush3.bf16.msra.mxu0 %v833_v14 }
 0x2f5   :  { %v717_v22 = vpop.f32.mrb[2].mxu0 }
 0x2f6   :  { %v394_v23 = vadd.f32 %v717_v22, %v982_v1  ;;  %v303_v24 = vpop.f32.mrb[3].mxu0 }
 0x2f7   :  { %v393_v25 = vadd.f32 %v303_v24, %v977_v0 }
 0x2f8   :  { %v724_v26 = vpop.f32.mrb[2].mxu1 }
 0x2f9   :  { %v397_v27 = vmax.f32 %v393_v25, %v394_v23  ;;  %v396_v28 = vadd.f32 %v724_v26, %v994_v4  ;;  %v384_v29 = vpop.f32.mrb[3].mxu1  ;;  %v521_v4 = vld [vmem:[%s1167_s3 + $0x28] sm:$0xff] }
 0x2fa   :  { %v395_v30 = vadd.f32 %v384_v29, %v987_v2  ;;  %v520_v2 = vld [vmem:[%s1167_s3 + $0x20] sm:$0xff]  ;;  %s615_s3 = sshll.u32 %s935_s18, 4  ;;  %s616_s3 = int_to_ptr.vmem [resolvable:$true] %s615_s3 }
 0x2fb   :  { %v398_v31 = vrot.slane %v397_v27, 4  ;;  %v842_v44 = vpack.c.bf16 %v521_v4, %v520_v2  ;;  %s884_s19 = scalar_lea.vmem %s616_s3, 512  ;;  %p889_p1 = scmp.lt.s32.totalorder %s616_s3, %s616_s3 }
 0x2fc   :  { %v404_v32 = vmax.f32 %v395_v30, %v396_v28  ;;  %p885_p0 = scmp.ne.s32.totalorder %s616_s3, %s884_s19  ;;  %p890_p2 = scmp.lt.s32.totalorder %s884_s19, %s884_s19 }
 0x2fd   :  { %v399_v33 = vmax.f32 %v397_v27, %v398_v31  ;;  %843 = vmatpush3.bf16.msra.mxu1 %v842_v44 }
 0x2fe   :  { %v405_v34 = vrot.slane %v404_v32, 4  ;;  %844 = vmatprep.subr.bf16.mxu1 %v932_v38  ;;  %p891_p3 = por %p890_p2, %p889_p1 }
 0x2ff   :  { %v400_v35 = vrot.slane %v399_v33, 2 }
 0x300   :  { %v406_v36 = vmax.f32 %v404_v32, %v405_v34  ;;  %p892_p4 = pnand %p891_p3, %p885_p0 }
 0x301   :  { %v401_v37 = vmax.f32 %v399_v33, %v400_v35  ;;  %846 = vmatpush3.bf16.msra.mxu1 %v845_v47 }
 0x302   :  { %v407_v39 = vrot.slane %v406_v36, 2  ;;  %847 = vmatprep.subr.bf16.mxu1 %v932_v38 }
 0x303   :  { %v402_v40 = vrot.slane %v401_v37, 1 }
 0x304   :  { %v408_v1 = vmax.f32 %v406_v36, %v407_v39 }
 0x305   :  { %v403_v0 = vmax.f32 %v401_v37, %v402_v40  ;;  %849 = vmatpush3.bf16.msra.mxu1 %v848_v50 }
 0x306   :  { %v409_v41 = vrot.slane %v408_v1, 1  ;;  %850 = vmatprep.subr.bf16.mxu1 %v932_v38 }
 0x308   :  { %v410_v42 = vmax.f32 %v408_v1, %v409_v41 }
 0x309   :  { %852 = vmatpush3.bf16.msra.mxu1 %v851_v53 }
 0x30a   :  { %v437_v43 = vsel %vm436_vm2, %v410_v42, %v403_v0  ;;  %853 = vmatprep.subr.bf16.mxu1 %v932_v38 }
 0x30b   :  { %758 = vmatmul.mubr.f32.vlgmr.msra.gmra.mrb[4].mxu0 %v437_v43 }
 0x30d   :  { %855 = vmatpush3.bf16.msra.mxu1 %v854_v56 }
 0x30e   :  { %856 = vmatprep.subr.bf16.mxu1 %v932_v38 }
 0x311   :  { %858 = vmatpush3.bf16.msra.mxu1 %v857_v59 }
 0x3de   :  { %v505_v61 = vpop.f32.mrb[4].mxu0 }
 0x3df   :  { %v506_v62 = vadd.f32 %v644_v60, %v505_v61  ;;  %v759_v63 = vpop.f32.mrb[5].mxu0 }
 0x3e1   :  { %v510_v3 = vmul.f32 1.442695, %v506_v62  ;;  %vm509_vm3 = vcmp.gt.f32.partialorder %v506_v62, 0.0 }
 0x3e3   :  { %882 = vpow2.f32 %v510_v3 }
 0x3ed   :  { %v883_v38 = vpop.eup %882 }
 0x3ee   :  { %v645_v5 = vadd.f32 -1.0, %v883_v38 }
 0x3f0   :  { %v513_v6 = vmul.f32 1.6732632, %v645_v5 }
 0x3f2   :  { %v514_v7 = vsel %vm509_vm3, %v506_v62, %v513_v6 }
 0x3f3   :  { %v515_v8 = vmul.f32 1.050701, %v514_v7 }
 0x3f5   :  { %793 = vmatmul.mubr.f32.vlgmr.msra.gmra.mrb[4].mxu1 %v515_v8 }
 0x3f6   :  { %895 = shalt.err (!%p892_p4)
}
 0x3f7   :  { %s896_s21 = scalar_lea.hbm %s1169_s5, 512 }
 0x3f8   :  { %p897_p5 = scmp.ne.s32.totalorder %s1169_s5, %s896_s21  ;;  %p900_p6 = scmp.lt.u32.totalorder %s896_s21, %s1169_s5 }
 0x3fa   :  { %p902_p7 = pnand %p900_p6, %p897_p5 }
 0x3fc   :  { %905 = shalt.err (!%p902_p7)
}
 0x3fd   :  { %s936_s26 = smov 128   ;;  %s937_s27 = smov 8   ;;  %v646_v9 = vld [vmem:[%s1168_s4] ss:$0 sm:$0xff] }
 0x3fe   :  { %621 = dma.vmem_to_hbm [thread:$0]  %s616_s3, 512, %s1169_s5, [#allocation3], %s936_s26, %s936_s26, %s937_s27  }
 0x3ff   :  { %s938_s7 = smov [#allocation4]  }
 0x400   :  { %s628_s8 = sshll.u32 %s938_s7, 4  ;;  %s629_s8 = int_to_ptr.vmem [resolvable:$true] %s628_s8 }
 0x401   :  { %s906_s9 = scalar_lea.vmem %s629_s8, 32  ;;  %p911_p9 = scmp.lt.s32.totalorder %s629_s8, %s629_s8 }
 0x402   :  { %p907_p8 = scmp.ne.s32.totalorder %s629_s8, %s906_s9  ;;  %p912_p10 = scmp.lt.s32.totalorder %s906_s9, %s906_s9 }
 0x404   :  { %p913_p11 = por %p912_p10, %p911_p9 }
 0x406   :  { %p914_p12 = pnand %p913_p11, %p907_p8 }
 0x4c8   :  { %v605_v10 = vpop.f32.mrb[4].mxu1 }
 0x4c9   :  { %v606_v11 = vadd.f32 %v646_v9, %v605_v10  ;;  %v794_v12 = vpop.f32.mrb[5].mxu1 }
 0x4cb   :  { %609 = vst [vmem:[#allocation4] sm:$0x3] %v606_v11 }
 0x4cc   :  { %917 = shalt.err (!%p914_p12)
}
 0x4cd   :  { %s918_s11 = scalar_lea.hbm %s1170_s6, 32 }
 0x4ce   :  { %p919_p13 = scmp.ne.s32.totalorder %s1170_s6, %s918_s11  ;;  %p922_p0 = scmp.lt.u32.totalorder %s918_s11, %s1170_s6 }
 0x4d0   :  { %p924_p1 = pnand %p922_p0, %p919_p13 }
 0x4d2   :  { %927 = shalt.err (!%p924_p1)
}
 0x4d3   :  { %631 = dma.vmem_to_hbm [thread:$0]  %s629_s8, 32, %s1170_s6, [#allocation5]  }
 0x4d4   :  { %928 = dma.done.wait [#allocation3], 512  }
 0x4d5   :  { %929 = vsyncadd [#allocation3], 4294966784 }
 0x4d6   :  { %930 = dma.done.wait [#allocation5], 32  }
 0x4d7   :  { %931 = vsyncadd [#allocation5], 4294967264 }
 0x4d8   :  { %638 = vsyncpa [#allocation3], 1 }
 0x4d9   :  { %639 = vsyncpa [#allocation5], 1 }

</bundles_post_ra>
